<compile_context>
chip_gen: v7x
topology: tpu7x:2x2x1
jax: 0.10.0
libtpu: 0.0.40
codegen_flags: <defaults>
</compile_context>

<pallas_src>
import jax
import jax.numpy as jnp
from jax.experimental import pallas as pl
from jax.experimental.pallas import tpu as pltpu

LANES = 128


def _round_up(a: int, m: int) -> int:
    return ((a + m - 1) // m) * m


def _msle_xla(x, y):
    """Plain-XLA fallback / tail reduction helper (sum, not mean)."""
    xf = x.astype(jnp.float32)
    yf = y.astype(jnp.float32)
    d = jnp.log(xf + 1.0) - jnp.log(yf + 1.0)
    return jnp.sum(d * d)


def msle_loss(x, y, *, block_rows=2048, min_kernel_elems=(1 << 17)):
    """Mean Squared Logarithmic Error computed with a Pallas TPU kernel."""
    assert x.shape == y.shape, "MSLELoss requires matching shapes"
    n_valid = x.size  # static mean divisor
    inv_n = 1.0 / float(n_valid)

    # Tiny-input guard: kernel dispatch + per-step overhead dominates; a fused
    # XLA elementwise+reduce is faster there.
    if n_valid < min_kernel_elems or n_valid < LANES:
        return _msle_xla(x, y) * inv_n

    xf = x.reshape(-1)
    yf = y.reshape(-1)

    # Split off the <128-element ragged tail instead of padding (avoids a full
    # padded copy of both inputs = ~2x HBM traffic for ragged sizes).
    rows = n_valid // LANES
    n_body = rows * LANES
    if n_body != n_valid:
        tail_sum = _msle_xla(xf[n_body:], yf[n_body:])
        xf = xf[:n_body]
        yf = yf[:n_body]
    else:
        tail_sum = jnp.float32(0.0)

    xf = xf.reshape(rows, LANES)
    yf = yf.reshape(rows, LANES)

    # Sublane-packing multiple for the narrower layout constraint of the inputs:
    # f32 -> 8, bf16/f16 -> 16, int8/fp8 -> 32.
    itemsize = min(jnp.dtype(x.dtype).itemsize, jnp.dtype(y.dtype).itemsize)
    mult = 8 * max(1, 4 // max(1, itemsize))

    # Tile size: big for large inputs (memory-bound sweet spot ~1 MiB/input tile),
    # clamped to the array for small ones, rounded to the packing multiple.
    block_rows_eff = max(mult, min(_round_up(block_rows, mult), _round_up(rows, mult)))
    num_blocks = (rows + block_rows_eff - 1) // block_rows_eff
    need_mask = (rows % block_rows_eff) != 0  # ragged last block handled in-kernel
    last_block = num_blocks - 1
    valid_rows_last = rows - last_block * block_rows_eff  # static Python int

    def kernel(x_ref, y_ref, o_ref):
        # Cast in-kernel (free VPU work under the DMA roofline); keep math in f32.
        xv = x_ref[...].astype(jnp.float32)
        yv = y_ref[...].astype(jnp.float32)
        d = jnp.log(xv + 1.0) - jnp.log(yv + 1.0)
        sq = d * d

        def reduce_and_store(vals):
            # Reduce sublane-groups with plain VALU adds -> one (8,128) partial tile.
            partial = jnp.sum(vals.reshape(block_rows_eff // 8, 8, LANES), axis=0)
            o_ref[...] = partial[None, :, :]

        if need_mask:
            pid = pl.program_id(0)

            @pl.when(pid != last_block)
            def _():
                reduce_and_store(sq)

            @pl.when(pid == last_block)
            def _():
                # Rows beyond `rows` in the overhanging last block read
                # unspecified data; select them away (select drops NaN/Inf safely
                # -- do NOT turn this into a multiply-by-mask).
                local_row = jax.lax.broadcasted_iota(
                    jnp.int32, (block_rows_eff, 1), 0
                )
                reduce_and_store(jnp.where(local_row < valid_rows_last, sq, 0.0))
        else:
            reduce_and_store(sq)

    partials = pl.pallas_call(
        kernel,
        out_shape=jax.ShapeDtypeStruct((num_blocks, 8, LANES), jnp.float32),
        grid_spec=pltpu.PrefetchScalarGridSpec(
            num_scalar_prefetch=0,
            grid=(num_blocks,),
            in_specs=[
                pl.BlockSpec((block_rows_eff, LANES), lambda i: (i, 0)),
                pl.BlockSpec((block_rows_eff, LANES), lambda i: (i, 0)),
            ],
            out_specs=pl.BlockSpec((1, 8, LANES), lambda i: (i, 0, 0)),
        ),
        compiler_params=pltpu.CompilerParams(
            # Independent partial sums per block -> fully parallel grid axis.
            # TODO(synk): on v7x, verify via trace that both TensorCores are used;
            # if not, switch this axis to pltpu.CORE_PARALLEL.
            dimension_semantics=("parallel",)
        ),
    )(xf, yf)

    # Tiny final reduction (num_blocks * 4 KiB) done in XLA; exact mean divisor.
    return (jnp.sum(partials) + tail_sum) * inv_n


def _reference(x, y):
    xf = x.astype(jnp.float32)
    yf = y.astype(jnp.float32)
    return jnp.mean((jnp.log(xf + 1.0) - jnp.log(yf + 1.0)) ** 2)


if __name__ == "__main__":
    key = jax.random.PRNGKey(0)
    k1, k2, k3, k4 = jax.random.split(key, 4)

    # Small NCHW shapes consistent with the module's usage; positive values so
    # log(x+1) is well defined (same domain assumption as the PyTorch module).
    shape = (2, 4, 16, 16)
    x = jax.random.uniform(k1, shape, dtype=jnp.float32, minval=0.0, maxval=5.0)
    y = jax.random.uniform(k2, shape, dtype=jnp.float32, minval=0.0, maxval=5.0)

    # Force the Pallas kernel path (the default small-input guard would use XLA
    # at this tiny demo size).
    loss = jax.block_until_ready(msle_loss(x, y, min_kernel_elems=0))
    ref = _reference(x, y)
    assert jnp.allclose(loss, ref, rtol=1e-5, atol=1e-6), (loss, ref)

    # Also check the default (guarded) path agrees.
    loss_default = jax.block_until_ready(msle_loss(x, y))
    assert jnp.allclose(loss_default, ref, rtol=1e-5, atol=1e-6), (loss_default, ref)

    # Ragged size: exercises the in-kernel last-block mask and the XLA tail path.
    rshape = (3, 5, 7, 11)  # 1155 elements = 9 full 128-lane rows + 3-element tail
    xr = jax.random.uniform(k3, rshape, dtype=jnp.float32, minval=0.0, maxval=5.0)
    yr = jax.random.uniform(k4, rshape, dtype=jnp.float32, minval=0.0, maxval=5.0)
    loss_r = jax.block_until_ready(msle_loss(xr, yr, min_kernel_elems=0))
    ref_r = _reference(xr, yr)
    assert jnp.allclose(loss_r, ref_r, rtol=1e-5, atol=1e-6), (loss_r, ref_r)

    print("KERNEL_OK")
</pallas_src>

<mosaic_0001>
module attributes {stable_mosaic.version = 11 : i64} {
  func.func @kernel(%arg0: i32, %arg1: memref<16x128xf32, #tpu.memory_space<vmem>>, %arg2: memref<16x128xf32, #tpu.memory_space<vmem>>, %arg3: memref<1x8x128xf32, #tpu.memory_space<vmem>>) attributes {dimension_semantics = [#tpu.dimension_semantics<parallel>], iteration_bounds = array<i64: 1>, scalar_prefetch = 0 : i64, scratch_operands = 0 : i64, tpu.core_type = #tpu.core_type<tc>, window_params = [{transform_indices = @transform_0, window_bounds = array<i64: 16, 128>}, {transform_indices = @transform_1, window_bounds = array<i64: 16, 128>}, {transform_indices = @transform_2, window_bounds = array<i64: 1, 8, 128>}]} {
    %c0 = arith.constant 0 : index
    %c0_0 = arith.constant 0 : index
    %0 = vector.load %arg1[%c0, %c0_0] : memref<16x128xf32, #tpu.memory_space<vmem>>, vector<16x128xf32>
    %c0_1 = arith.constant 0 : index
    %c0_2 = arith.constant 0 : index
    %1 = vector.load %arg2[%c0_1, %c0_2] : memref<16x128xf32, #tpu.memory_space<vmem>>, vector<16x128xf32>
    %cst = arith.constant 1.000000e+00 : f32
    %2 = vector.broadcast %cst : f32 to vector<16x128xf32>
    %3 = arith.addf %0, %2 : vector<16x128xf32>
    %4 = math.log %3 : vector<16x128xf32>
    %cst_3 = arith.constant 1.000000e+00 : f32
    %5 = vector.broadcast %cst_3 : f32 to vector<16x128xf32>
    %6 = arith.addf %1, %5 : vector<16x128xf32>
    %7 = math.log %6 : vector<16x128xf32>
    %8 = arith.subf %4, %7 : vector<16x128xf32>
    %9 = arith.mulf %8, %8 : vector<16x128xf32>
    %10 = vector.shape_cast %9 : vector<16x128xf32> to vector<2x8x128xf32>
    %cst_4 = arith.constant dense<0.000000e+00> : vector<8x128xf32>
    %11 = vector.multi_reduction <add>, %10, %cst_4 [0] : vector<2x8x128xf32> to vector<8x128xf32>
    %12 = vector.shape_cast %11 : vector<8x128xf32> to vector<1x8x128xf32>
    %c0_5 = arith.constant 0 : index
    %c0_6 = arith.constant 0 : index
    %c0_7 = arith.constant 0 : index
    %13 = vector.load %arg3[%c0_5, %c0_6, %c0_7] : memref<1x8x128xf32, #tpu.memory_space<vmem>>, vector<1x8x128xf32>
    tpu.vector_store %arg3[%c0_5, %c0_6, %c0_7], %12 {strides = array<i32>} : memref<1x8x128xf32, #tpu.memory_space<vmem>>, vector<1x8x128xf32>,
    return
  }
  func.func @transform_0(%arg0: i32) -> (i32, i32) {
    %c0_i32 = arith.constant 0 : i32
    %c0_i32_0 = arith.constant 0 : i32
    return %arg0, %c0_i32 : i32, i32
  }
  func.func @transform_1(%arg0: i32) -> (i32, i32) {
    %c0_i32 = arith.constant 0 : i32
    %c0_i32_0 = arith.constant 0 : i32
    return %arg0, %c0_i32 : i32, i32
  }
  func.func @transform_2(%arg0: i32) -> (i32, i32, i32) {
    %c0_i32 = arith.constant 0 : i32
    %c0_i32_0 = arith.constant 0 : i32
    %c0_i32_1 = arith.constant 0 : i32
    return %arg0, %c0_i32, %c0_i32_0 : i32, i32, i32
  }
}

</mosaic_0001>

<bundles_post_ra>
// kernel: tpu_custom_call.1
= control target key start
LH: loop header
LB: loop body
LE: loop exit
PB: predicated region body
PF: predicated region fallthrough
CT: control target
= control target key end

     0   :  { %7 = vsyncpa [#allocation3], 0  ;;  %s219_s0 = inlined_call_operand.hbm [shape: f32[16,128], index: 0, kind: input, shape index: {}]   ;;  %s220_s1 = inlined_call_operand.hbm [shape: f32[16,128], index: 1, kind: input, shape index: {}]   ;;  %s221_s2 = inlined_call_operand.hbm [shape: f32[1,8,128], index: 2, kind: output, shape index: {}]  }
   0x1   :  { %8 = vsyncpa [#allocation6], 0 }
   0x2   :  { %9 = vsyncpa [#allocation4], 0  ;;  %s163_s9 = smov [#allocation2]   ;;  %s91_s13 = scalar_lea.hbm %s219_s0, 256 }
   0x3   :  { %s15_s10 = sshll.u32 %s163_s9, 4  ;;  %p92_p0 = scmp.ne.s32.totalorder %s219_s0, %s91_s13  ;;  %s16_s10 = int_to_ptr.vmem [resolvable:$true] %s15_s10 }
   0x4   :  { %p95_p1 = scmp.lt.u32.totalorder %s91_s13, %s219_s0 }
   0x6   :  { %p97_p2 = pnand %p95_p1, %p92_p0 }
   0x8   :  { %100 = shalt.err (!%p97_p2)
}
   0x9   :  { %s101_s18 = scalar_lea.vmem %s16_s10, 256  ;;  %p106_p4 = scmp.lt.s32.totalorder %s16_s10, %s16_s10 }
   0xa   :  { %p102_p3 = scmp.ne.s32.totalorder %s16_s10, %s101_s18  ;;  %p107_p5 = scmp.lt.s32.totalorder %s101_s18, %s101_s18 }
   0xc   :  { %p108_p6 = por %p107_p5, %p106_p4 }
   0xe   :  { %p109_p7 = pnand %p108_p6, %p102_p3 }
  0x10   :  { %112 = shalt.err (!%p109_p7)
}
  0x11   :  { %s164_s19 = smov 128   ;;  %s165_s20 = smov 8  }
  0x12   :  { %21 = dma.hbm_to_vmem [thread:$0]  %s219_s0, 256, %s16_s10, [#allocation3], %s164_s19, %s164_s19, %s165_s20  }
  0x13   :  { %s166_s23 = smov [#allocation5]   ;;  %s113_s27 = scalar_lea.hbm %s220_s1, 256 }
  0x14   :  { %s27_s24 = sshll.u32 %s166_s23, 4  ;;  %p114_p8 = scmp.ne.s32.totalorder %s220_s1, %s113_s27  ;;  %s28_s24 = int_to_ptr.vmem [resolvable:$true] %s27_s24 }
  0x15   :  { %p117_p9 = scmp.lt.u32.totalorder %s113_s27, %s220_s1 }
  0x17   :  { %p119_p10 = pnand %p117_p9, %p114_p8 }
  0x19   :  { %122 = shalt.err (!%p119_p10)
}
  0x1a   :  { %s123_s4 = scalar_lea.vmem %s28_s24, 256  ;;  %p128_p12 = scmp.lt.s32.totalorder %s28_s24, %s28_s24 }
  0x1b   :  { %p124_p11 = scmp.ne.s32.totalorder %s28_s24, %s123_s4  ;;  %p129_p13 = scmp.lt.s32.totalorder %s123_s4, %s123_s4 }
  0x1d   :  { %p130_p0 = por %p129_p13, %p128_p12 }
  0x1f   :  { %p131_p1 = pnand %p130_p0, %p124_p11 }
  0x21   :  { %134 = shalt.err (!%p131_p1)
}
  0x22   :  { %33 = dma.hbm_to_vmem [thread:$0]  %s220_s1, 256, %s28_s24, [#allocation6], %s164_s19, %s164_s19, %s165_s20  }
  0x23   :  { %157 = dma.done.wait [#allocation3], 256  }
  0x24   :  { %158 = vsyncadd [#allocation3], 4294967040 }
  0x25   :  { %159 = dma.done.wait [#allocation6], 256  }
  0x26   :  { %160 = vsyncadd [#allocation6], 4294967040  ;;  %v40_v0 = vld [vmem:[#allocation2] sm:$0xff]  ;;  %v41_v1 = vld [vmem:[#allocation2 + $0x8] sm:$0xff]  ;;  %s167_s1 = smov [#allocation7]  }
  0x27   :  { %v42_v2 = vld [vmem:[#allocation5] sm:$0xff]  ;;  %v43_v3 = vld [vmem:[#allocation5 + $0x8] sm:$0xff]  ;;  %v44_v4 = vadd.f32 1.0, %v40_v0  ;;  %v45_v5 = vadd.f32 1.0, %v41_v1  ;;  %s68_s6 = sshll.u32 %s167_s1, 4  ;;  %s69_s6 = int_to_ptr.vmem [resolvable:$true] %s68_s6 }
  0x28   :  { %v50_v6 = vadd.f32 1.0, %v42_v2  ;;  %v51_v7 = vadd.f32 1.0, %v43_v3  ;;  %s135_s7 = scalar_lea.vmem %s69_s6, 128  ;;  %p140_p3 = scmp.lt.s32.totalorder %s69_s6, %s69_s6 }
  0x29   :  { %83 = vlog2.f32 %v44_v4  ;;  %p136_p2 = scmp.ne.s32.totalorder %s69_s6, %s135_s7  ;;  %p141_p4 = scmp.lt.s32.totalorder %s135_s7, %s135_s7 }
  0x2a   :  { %85 = vlog2.f32 %v45_v5 }
  0x2b   :  { %87 = vlog2.f32 %v50_v6  ;;  %p142_p5 = por %p141_p4, %p140_p3 }
  0x2c   :  { %89 = vlog2.f32 %v51_v7 }
  0x2d   :  { %p143_p6 = pnand %p142_p5, %p136_p2 }
  0x33   :  { %v84_v8 = vpop.eup %83 }
  0x34   :  { %v86_v9 = vpop.eup %85  ;;  %v47_v10 = vmul.f32 0.6931472, %v84_v8 }
  0x35   :  { %v88_v11 = vpop.eup %87  ;;  %v49_v12 = vmul.f32 0.6931472, %v86_v9 }
  0x36   :  { %v90_v13 = vpop.eup %89  ;;  %v53_v14 = vmul.f32 0.6931472, %v88_v11 }
  0x37   :  { %v55_v15 = vmul.f32 0.6931472, %v90_v13 }
  0x38   :  { %v56_v16 = vsub.f32 %v47_v10, %v53_v14 }
  0x39   :  { %v57_v17 = vsub.f32 %v49_v12, %v55_v15 }
  0x3a   :  { %v58_v18 = vmul.f32 %v56_v16, %v56_v16 }
  0x3b   :  { %v59_v19 = vmul.f32 %v57_v17, %v57_v17 }
  0x3d   :  { %v60_v20 = vadd.f32 %v59_v19, %v58_v18 }
  0x3f   :  { %61 = vst [vmem:[#allocation7] sm:$0xff] %v60_v20 }
  0x40   :  { %146 = shalt.err (!%p143_p6)
}
  0x41   :  { %s147_s10 = scalar_lea.hbm %s221_s2, 128 }
  0x42   :  { %p148_p7 = scmp.ne.s32.totalorder %s221_s2, %s147_s10  ;;  %p151_p8 = scmp.lt.u32.totalorder %s147_s10, %s221_s2 }
  0x44   :  { %p153_p9 = pnand %p151_p8, %p148_p7 }
  0x46   :  { %156 = shalt.err (!%p153_p9)
}
  0x47   :  { %71 = dma.vmem_to_hbm [thread:$0]  %s69_s6, 128, %s221_s2, [#allocation4]  }
  0x48   :  { %161 = dma.done.wait [#allocation4], 128  }
  0x49   :  { %162 = vsyncadd [#allocation4], 4294967168 }
  0x4a   :  { %75 = vsyncpa [#allocation3], 1 }
  0x4b   :  { %76 = vsyncpa [#allocation6], 1 }
  0x4c   :  { %77 = vsyncpa [#allocation4], 1 }

</bundles_post_ra>
